<compile_context>
chip_gen: v7x
topology: tpu7x:2x2x1
jax: 0.10.0
libtpu: 0.0.40
codegen_flags: <defaults>
</compile_context>

<pallas_src>
import functools
import math
from typing import NamedTuple, Optional

import jax
import jax.numpy as jnp
from jax.experimental import pallas as pl
from jax.experimental.pallas import tpu as pltpu


_VALID_ACTS = (None, "relu", "tanh", "sigmoid", "gelu")


def _round_up(x, m):
    return ((x + m - 1) // m) * m


def _cdiv(a, b):
    return -(-a // b)


def _sublane(dtype):
    # rows packed per 32-bit sublane group: f32 -> 8, bf16 -> 16, int8/fp8 -> 32
    return max(8, 32 // jnp.dtype(dtype).itemsize)


def _pick_tile(dim, max_tile, align, pref_align=None):
    """Tile <= ~max_tile, multiple of `align` (large tiles of `pref_align`),
    keeping padding waste below one tile."""
    pref_align = pref_align or align
    if dim <= max_tile:
        return _round_up(dim, align)
    nt = _cdiv(dim, max_tile)
    return _round_up(_cdiv(dim, nt), pref_align)


def _gen_config():
    """Generation-specific tile defaults and VMEM budget."""
    kind = ""
    try:
        kind = jax.devices()[0].device_kind.lower()
    except Exception:
        pass
    vmem_cap = None
    try:
        vmem_cap = int(pltpu.get_tpu_info().vmem_capacity_bytes)
    except Exception:
        pass
    if "v7" in kind or "7x" in kind:
        cfg = dict(mn=1024, k=1024, align=256, phys=64 << 20)
    elif "v6" in kind:
        cfg = dict(mn=1536, k=1024, align=256, phys=128 << 20)
    elif "v5" in kind:
        cfg = dict(mn=512, k=1024, align=128, phys=128 << 20)
    else:  # unknown chip: be conservative
        cfg = dict(mn=512, k=512, align=128, phys=64 << 20)
    if vmem_cap is None:
        vmem_cap = cfg["phys"]
    # leave headroom for Mosaic internal scratch / semaphores (esp. v7x 64 MiB)
    cfg["budget"] = int(vmem_cap * 0.85)
    return cfg


class FFParams(NamedTuple):
    w: jax.Array                  # (k_p, n_p), compute dtype, pre-transposed + padded
    b: Optional[jax.Array]        # (1, n_p) f32, or None
    d_in: int
    d_out: int
    tm_max: int
    tn: int
    tk: int
    vmem_limit: int
    compute_dtype: object         # numpy dtype


def prepare_feedforward_params(weight, bias=None, *, compute_dtype=jnp.bfloat16,
                               max_tm=None, max_tn=None, max_tk=None):
    """One-time parameter preparation (analogue of constructing nn.Linear).

    weight : (d_out, d_in)  -- PyTorch nn.Linear layout.
    bias   : (d_out,) or None.
    compute_dtype : MXU operand dtype (bf16 default; f32 accumulation always).
    """
    # TODO(synk): optional fp8 (v7x) / int8 (v5e/v6e) quantized weight paths.
    d_out, d_in = weight.shape
    cfg = _gen_config()
    max_tm = max_tm or cfg["mn"]
    max_tn = max_tn or cfg["mn"]
    max_tk = max_tk or cfg["k"]
    align_n = 128 if max_tn < cfg["align"] else cfg["align"]
    align_k = 128 if max_tk < cfg["align"] else cfg["align"]
    sub = _sublane(compute_dtype)

    tn = _pick_tile(d_out, max_tn, 128, align_n)
    tk = _pick_tile(d_in, max_tk, 128, align_k)
    tm = _round_up(max_tm, sub)

    bpe = jnp.dtype(compute_dtype).itemsize
    has_bias = bias is not None

    def footprint(tm_, tn_, tk_):
        f = 2 * tm_ * tk_ * bpe            # double-buffered x tiles
        f += 2 * tk_ * tn_ * bpe           # double-buffered W tiles
        f += 2 * tm_ * tn_ * 4             # f32 output / accumulator tiles
        if has_bias:
            f += 2 * tn_ * 4
        return f

    # Shrink tiles until the double-buffered working set fits the VMEM budget.
    while footprint(tm, tn, tk) > cfg["budget"]:
        if tk > 128:
            tk = max(128, _round_up(tk // 2, 128))
        elif tn > 128:
            tn = max(128, _round_up(tn // 2, 128))
        elif tm > sub:
            tm = max(sub, _round_up(tm // 2, sub))
        else:
            break

    n_p = _round_up(d_out, tn)
    k_p = _round_up(d_in, tk)

    # Transpose + cast + pad ONCE, outside the per-call hot path.
    w_t = jnp.asarray(weight).T.astype(compute_dtype)       # (d_in, d_out)
    if (k_p, n_p) != (d_in, d_out):
        w_t = jnp.pad(w_t, ((0, k_p - d_in), (0, n_p - d_out)))
    b2d = None
    if has_bias:
        b2d = jnp.asarray(bias).astype(jnp.float32).reshape(1, d_out)
        if n_p != d_out:
            b2d = jnp.pad(b2d, ((0, 0), (0, n_p - d_out)))

    vmem_limit = int(min(cfg["budget"],
                         max(32 << 20, 2 * footprint(tm, tn, tk))))
    return FFParams(w=w_t, b=b2d, d_in=d_in, d_out=d_out, tm_max=tm,
                    tn=tn, tk=tk, vmem_limit=vmem_limit,
                    compute_dtype=jnp.dtype(compute_dtype))


def _ff_kernel(*refs, activation, has_bias, acc_in_out):
    """One (tm, tn) output tile; grid axis 2 walks the d_in (K) reduction."""
    if has_bias:
        x_ref, w_ref, b_ref, o_ref = refs[:4]
        scratch = refs[4:]
    else:
        x_ref, w_ref, o_ref = refs[:3]
        b_ref = None
        scratch = refs[3:]
    acc_ref = o_ref if acc_in_out else scratch[0]
    k = pl.program_id(2)

    @pl.when(k == 0)
    def _init():
        acc_ref[...] = jnp.zeros_like(acc_ref)

    acc_ref[...] += jnp.dot(x_ref[...], w_ref[...],
                            preferred_element_type=jnp.float32)

    @pl.when(k == pl.num_programs(2) - 1)
    def _epilogue():
        y = acc_ref[...]
        if has_bias:
            y = y + b_ref[...]                  # bias broadcast over rows (f32)
        if activation == "relu":
            y = jnp.maximum(y, 0.0)
        elif activation == "tanh":
            y = jnp.tanh(y)
        elif activation == "sigmoid":
            y = jax.nn.sigmoid(y)
        elif activation == "gelu":
            y = jax.nn.gelu(y, approximate=False)   # torch nn.GELU default = erf
        o_ref[...] = y.astype(o_ref.dtype)


def feedforward(x, params: FFParams, *, activation=None):
    """Eval-mode Feedforward.forward: activation(linear(dropout(x))), dropout=id."""
    if activation not in _VALID_ACTS:
        raise ValueError(f"unsupported activation: {activation}")
    # TODO(synk): training-mode dropout (p=0.2) on x is not implemented; this
    # kernel reproduces eval mode where nn.Dropout is the identity.

    orig_shape = x.shape
    assert orig_shape[-1] == params.d_in, "x last dim must equal d_in"
    out_dtype = x.dtype

    x2d = x.reshape(-1, params.d_in)                 # torch .view(-1, size[-1])
    m = x2d.shape[0]
    if x2d.dtype != params.compute_dtype:
        x2d = x2d.astype(params.compute_dtype)

    k_p, n_p = params.w.shape
    if k_p != params.d_in:                           # zero-pad K (reduction axis)
        x2d = jnp.pad(x2d, ((0, 0), (0, k_p - params.d_in)))

    sub = _sublane(params.compute_dtype)
    tm = _pick_tile(m, params.tm_max, sub)
    tn, tk = params.tn, params.tk
    grid = (pl.cdiv(m, tm), n_p // tn, k_p // tk)

    acc_in_out = (out_dtype == jnp.float32)
    scratch_shapes = [] if acc_in_out else [pltpu.VMEM((tm, tn), jnp.float32)]

    has_bias = params.b is not None
    in_specs = [pl.BlockSpec((tm, tk), lambda i, j, k: (i, k)),   # x tile
                pl.BlockSpec((tk, tn), lambda i, j, k: (k, j))]   # W^T tile
    operands = [x2d, params.w]
    if has_bias:
        in_specs.append(pl.BlockSpec((1, tn), lambda i, j, k: (0, j)))
        operands.append(params.b)

    bpe_in = jnp.dtype(params.compute_dtype).itemsize
    bpe_out = jnp.dtype(out_dtype).itemsize
    n_transc = m * params.d_out if activation in ("tanh", "sigmoid", "gelu") else 0
    cost = pl.CostEstimate(
        flops=2 * m * k_p * n_p,
        transcendentals=n_transc,
        bytes_accessed=(grid[1] * m * k_p * bpe_in       # x re-read per N tile
                        + grid[0] * k_p * n_p * bpe_in   # W re-read per M tile
                        + m * n_p * bpe_out),            # output write
    )

    out2d = pl.pallas_call(
        functools.partial(_ff_kernel, activation=activation,
                          has_bias=has_bias, acc_in_out=acc_in_out),
        out_shape=jax.ShapeDtypeStruct((m, n_p), out_dtype),
        grid_spec=pltpu.PrefetchScalarGridSpec(
            num_scalar_prefetch=0,
            grid=grid,
            in_specs=in_specs,
            out_specs=pl.BlockSpec((tm, tn), lambda i, j, k: (i, j)),
            scratch_shapes=scratch_shapes,
        ),
        compiler_params=pltpu.CompilerParams(
            dimension_semantics=("parallel", "parallel", "arbitrary"),
            vmem_limit_bytes=params.vmem_limit,
        ),
        cost_estimate=cost,
    )(*operands)

    if n_p != params.d_out:
        out2d = out2d[:, :params.d_out]
    return out2d.reshape(*orig_shape[:-1], params.d_out)


if __name__ == "__main__":
    key = jax.random.PRNGKey(0)
    kx, kw, kb, kx2, kw2, kb2 = jax.random.split(key, 6)

    # --- small case matching the module demo (f32 operand path) -------------
    batch, seq, d_in, d_out = 2, 8, 32, 32
    x = jax.random.normal(kx, (batch, seq, d_in), dtype=jnp.float32)
    bound = 1.0 / math.sqrt(d_in)
    weight = jax.random.uniform(kw, (d_out, d_in), jnp.float32, -bound, bound)
    bias = jax.random.uniform(kb, (d_out,), jnp.float32, -bound, bound)

    p_f32 = prepare_feedforward_params(weight, bias, compute_dtype=jnp.float32)
    out = feedforward(x, p_f32, activation="relu")
    jax.block_until_ready(out)
    ref = jnp.maximum(x.reshape(-1, d_in) @ weight.T + bias, 0.0).reshape(
        batch, seq, d_out)
    assert out.shape == (batch, seq, d_out)
    assert jnp.allclose(out, ref, atol=2e-3, rtol=2e-3)

    # --- same case on the default bf16 operand path (f32 accumulation) ------
    p_bf16 = prepare_feedforward_params(weight, bias)     # bf16 by default
    out_b = feedforward(x, p_bf16, activation="relu")
    jax.block_until_ready(out_b)
    assert jnp.allclose(out_b, ref, atol=3e-2, rtol=3e-2)

    # --- no-bias path (bias operand and epilogue add dropped entirely) ------
    p_nob = prepare_feedforward_params(weight, None, compute_dtype=jnp.float32)
    out_nb = feedforward(x, p_nob, activation=None)
    jax.block_until_ready(out_nb)
    ref_nb = (x.reshape(-1, d_in) @ weight.T).reshape(batch, seq, d_out)
    assert jnp.allclose(out_nb, ref_nb, atol=2e-3, rtol=2e-3)

    # --- multi-tile case (exercises M/N/K grid + k-resident accumulation) ---
    batch2, seq2, d_in2, d_out2 = 4, 64, 256, 384
    x2 = jax.random.normal(kx2, (batch2, seq2, d_in2), dtype=jnp.float32)
    bound2 = 1.0 / math.sqrt(d_in2)
    w2 = jax.random.uniform(kw2, (d_out2, d_in2), jnp.float32, -bound2, bound2)
    b2 = jax.random.uniform(kb2, (d_out2,), jnp.float32, -bound2, bound2)

    p2 = prepare_feedforward_params(w2, b2, max_tm=128, max_tn=128, max_tk=128)
    out2 = feedforward(x2, p2, activation="tanh")
    jax.block_until_ready(out2)
    ref2 = jnp.tanh(x2.reshape(-1, d_in2) @ w2.T + b2).reshape(
        batch2, seq2, d_out2)
    assert jnp.allclose(out2, ref2, atol=3e-2, rtol=3e-2)

    print("KERNEL_OK")
</pallas_src>

<mosaic_0001>
module attributes {stable_mosaic.version = 11 : i64} {
  func.func @_ff_kernel(%arg0: i32, %arg1: i32, %arg2: i32, %arg3: memref<16x128xf32, #tpu.memory_space<vmem>>, %arg4: memref<128x128xf32, #tpu.memory_space<vmem>>, %arg5: memref<1x128xf32, #tpu.memory_space<vmem>>, %arg6: memref<16x128xf32, #tpu.memory_space<vmem>>) attributes {dimension_semantics = [#tpu.dimension_semantics<parallel>, #tpu.dimension_semantics<parallel>, #tpu.dimension_semantics<arbitrary>], iteration_bounds = array<i64: 1, 1, 1>, scalar_prefetch = 0 : i64, scratch_operands = 0 : i64, tpu.core_type = #tpu.core_type<tc>, window_params = [{transform_indices = @transform_0, window_bounds = array<i64: 16, 128>}, {transform_indices = @transform_1, window_bounds = array<i64: 128, 128>}, {transform_indices = @transform_2, window_bounds = array<i64: 1, 128>}, {transform_indices = @transform_3, window_bounds = array<i64: 16, 128>}]} {
    %c0_i32 = arith.constant 0 : i32
    %0 = arith.cmpi eq, %arg2, %c0_i32 : i32
    %1 = arith.extui %0 : i1 to i32
    %c0_i32_0 = arith.constant 0 : i32
    %2 = arith.cmpi ne, %1, %c0_i32_0 : i32
    scf.if %2 {
      %cst_10 = arith.constant 0.000000e+00 : f32
      %12 = vector.broadcast %cst_10 : f32 to vector<16x128xf32>
      %c0_11 = arith.constant 0 : index
      %c0_12 = arith.constant 0 : index
      %13 = vector.load %arg6[%c0_11, %c0_12] : memref<16x128xf32, #tpu.memory_space<vmem>>, vector<16x128xf32>
      tpu.vector_store %arg6[%c0_11, %c0_12], %12 {strides = array<i32>} : memref<16x128xf32, #tpu.memory_space<vmem>>, vector<16x128xf32>,
    } else {
    }
    %c0 = arith.constant 0 : index
    %c0_1 = arith.constant 0 : index
    %3 = vector.load %arg6[%c0, %c0_1] : memref<16x128xf32, #tpu.memory_space<vmem>>, vector<16x128xf32>
    %c0_2 = arith.constant 0 : index
    %c0_3 = arith.constant 0 : index
    %4 = vector.load %arg3[%c0_2, %c0_3] : memref<16x128xf32, #tpu.memory_space<vmem>>, vector<16x128xf32>
    %c0_4 = arith.constant 0 : index
    %c0_5 = arith.constant 0 : index
    %5 = vector.load %arg4[%c0_4, %c0_5] : memref<128x128xf32, #tpu.memory_space<vmem>>, vector<128x128xf32>
    %cst = arith.constant dense<0.000000e+00> : vector<16x128xf32>
    %6 = tpu.matmul %4, %5, %cst {dimension_numbers = #tpu.dot_dimension_numbers<[1], [0], [0], [1], [0, 0, 1, 1], [], []>} : vector<16x128xf32>, vector<128x128xf32>, vector<16x128xf32> -> vector<16x128xf32>
    %7 = arith.addf %3, %6 : vector<16x128xf32>
    %c0_6 = arith.constant 0 : index
    %c0_7 = arith.constant 0 : index
    %8 = vector.load %arg6[%c0_6, %c0_7] : memref<16x128xf32, #tpu.memory_space<vmem>>, vector<16x128xf32>
    tpu.vector_store %arg6[%c0_6, %c0_7], %7 {strides = array<i32>} : memref<16x128xf32, #tpu.memory_space<vmem>>, vector<16x128xf32>,
    %c0_i32_8 = arith.constant 0 : i32
    %9 = arith.cmpi eq, %arg2, %c0_i32_8 : i32
    %10 = arith.extui %9 : i1 to i32
    %c0_i32_9 = arith.constant 0 : i32
    %11 = arith.cmpi ne, %10, %c0_i32_9 : i32
    scf.if %11 {
      %c0_10 = arith.constant 0 : index
      %c0_11 = arith.constant 0 : index
      %12 = vector.load %arg6[%c0_10, %c0_11] : memref<16x128xf32, #tpu.memory_space<vmem>>, vector<16x128xf32>
      %c0_12 = arith.constant 0 : index
      %c0_13 = arith.constant 0 : index
      %13 = vector.load %arg5[%c0_12, %c0_13] : memref<1x128xf32, #tpu.memory_space<vmem>>, vector<1x128xf32>
      %14 = vector.broadcast %13 : vector<1x128xf32> to vector<16x128xf32>
      %15 = arith.addf %12, %14 : vector<16x128xf32>
      %cst_14 = arith.constant 0.000000e+00 : f32
      %16 = vector.broadcast %cst_14 : f32 to vector<16x128xf32>
      %17 = arith.maximumf %15, %16 : vector<16x128xf32>
      %c0_15 = arith.constant 0 : index
      %c0_16 = arith.constant 0 : index
      %18 = vector.load %arg6[%c0_15, %c0_16] : memref<16x128xf32, #tpu.memory_space<vmem>>, vector<16x128xf32>
      tpu.vector_store %arg6[%c0_15, %c0_16], %17 {strides = array<i32>} : memref<16x128xf32, #tpu.memory_space<vmem>>, vector<16x128xf32>,
    } else {
    }
    return
  }
  func.func @transform_0(%arg0: i32, %arg1: i32, %arg2: i32) -> (i32, i32) {
    %c0_i32 = arith.constant 0 : i32
    return %arg0, %arg2 : i32, i32
  }
  func.func @transform_1(%arg0: i32, %arg1: i32, %arg2: i32) -> (i32, i32) {
    %c0_i32 = arith.constant 0 : i32
    return %arg2, %arg1 : i32, i32
  }
  func.func @transform_2(%arg0: i32, %arg1: i32, %arg2: i32) -> (i32, i32) {
    %c0_i32 = arith.constant 0 : i32
    %c0_i32_0 = arith.constant 0 : i32
    return %c0_i32, %arg1 : i32, i32
  }
  func.func @transform_3(%arg0: i32, %arg1: i32, %arg2: i32) -> (i32, i32) {
    %c0_i32 = arith.constant 0 : i32
    return %arg0, %arg1 : i32, i32
  }
}

</mosaic_0001>

<bundles_post_ra>
// kernel: tpu_custom_call.1
= control target key start
LH: loop header
LB: loop body
LE: loop exit
PB: predicated region body
PF: predicated region fallthrough
CT: control target
= control target key end

     0   :  { %8 = vsyncpa [#allocation3], 0  ;;  %s421_s0 = inlined_call_operand.hbm [shape: f32[16,128], index: 0, kind: input, shape index: {}]   ;;  %s422_s1 = inlined_call_operand.hbm [shape: f32[128,128], index: 1, kind: input, shape index: {}]   ;;  %s423_s2 = inlined_call_operand.vmem [shape: f32[1,128], index: 2, kind: input, shape index: {}]   ;;  %s424_s3 = inlined_call_operand.hbm [shape: f32[16,128], index: 3, kind: output, shape index: {}]  }
   0x1   :  { %9 = vsyncpa [#allocation6], 0 }
   0x2   :  { %10 = vsyncpa [#allocation4], 0  ;;  %s348_s12 = smov [#allocation2]   ;;  %s276_s16 = scalar_lea.hbm %s421_s0, 256 }
   0x3   :  { %s16_s13 = sshll.u32 %s348_s12, 4  ;;  %p277_p0 = scmp.ne.s32.totalorder %s421_s0, %s276_s16  ;;  %s17_s13 = int_to_ptr.vmem [resolvable:$true] %s16_s13 }
   0x4   :  { %p280_p1 = scmp.lt.u32.totalorder %s276_s16, %s421_s0 }
   0x6   :  { %p282_p2 = pnand %p280_p1, %p277_p0 }
   0x8   :  { %285 = shalt.err (!%p282_p2)
}
   0x9   :  { %s286_s21 = scalar_lea.vmem %s17_s13, 256  ;;  %p291_p4 = scmp.lt.s32.totalorder %s17_s13, %s17_s13 }
   0xa   :  { %p287_p3 = scmp.ne.s32.totalorder %s17_s13, %s286_s21  ;;  %p292_p5 = scmp.lt.s32.totalorder %s286_s21, %s286_s21 }
   0xc   :  { %p293_p6 = por %p292_p5, %p291_p4 }
   0xe   :  { %p294_p7 = pnand %p293_p6, %p287_p3 }
  0x10   :  { %297 = shalt.err (!%p294_p7)
}
  0x11   :  { %s349_s22 = smov 128   ;;  %s350_s23 = smov 8  }
  0x12   :  { %22 = dma.hbm_to_vmem [thread:$0]  %s421_s0, 256, %s17_s13, [#allocation3], %s349_s22, %s349_s22, %s350_s23  }
  0x13   :  { %s351_s26 = smov [#allocation5]   ;;  %s298_s30 = scalar_lea.hbm %s422_s1, 2048 }
  0x14   :  { %s28_s27 = sshll.u32 %s351_s26, 4  ;;  %p299_p8 = scmp.ne.s32.totalorder %s422_s1, %s298_s30  ;;  %s29_s27 = int_to_ptr.vmem [resolvable:$true] %s28_s27 }
  0x15   :  { %p302_p9 = scmp.lt.u32.totalorder %s298_s30, %s422_s1 }
  0x17   :  { %p304_p10 = pnand %p302_p9, %p299_p8 }
  0x19   :  { %307 = shalt.err (!%p304_p10)
}
  0x1a   :  { %s308_s8 = scalar_lea.vmem %s29_s27, 2048  ;;  %p313_p12 = scmp.lt.s32.totalorder %s29_s27, %s29_s27 }
  0x1b   :  { %p309_p11 = scmp.ne.s32.totalorder %s29_s27, %s308_s8  ;;  %p314_p13 = scmp.lt.s32.totalorder %s308_s8, %s308_s8 }
  0x1d   :  { %p315_p0 = por %p314_p13, %p313_p12 }
  0x1f   :  { %p316_p1 = pnand %p315_p0, %p309_p11 }
  0x21   :  { %319 = shalt.err (!%p316_p1)
}
  0x22   :  { %34 = dma.hbm_to_vmem [thread:$0]  %s422_s1, 2048, %s29_s27, [#allocation6], %s349_s22, %s349_s22, %s350_s23  }
  0x23   :  { %342 = dma.done.wait [#allocation3], 256  }
  0x24   :  { %343 = vsyncadd [#allocation3], 4294967040 }
  0x25   :  { %344 = dma.done.wait [#allocation6], 2048  }
  0x26   :  { %345 = vsyncadd [#allocation6], 4294965248  ;;  %v53_v0 = vld [vmem:[#allocation5] sm:$0xff]  ;;  %v54_v1 = vld [vmem:[#allocation5 + $0x8] sm:$0xff]  ;;  %s352_s11 = smov [#allocation7]  }
  0x27   :  { %v55_v2 = vld [vmem:[#allocation5 + $0x10] sm:$0xff]  ;;  %v238_v3 = vpack.c.bf16 %v54_v1, %v53_v0  ;;  %v56_v4 = vld [vmem:[#allocation5 + $0x18] sm:$0xff]  ;;  %v57_v6 = vld [vmem:[#allocation5 + $0x20] sm:$0xff]  ;;  %s171_s12 = sshll.u32 %s352_s11, 4  ;;  %s172_s12 = int_to_ptr.vmem [resolvable:$true] %s171_s12 }
  0x28   :  { %v242_v5 = vpack.c.bf16 %v56_v4, %v55_v2  ;;  %v58_v7 = vld [vmem:[#allocation5 + $0x28] sm:$0xff]  ;;  %v51_v9 = vld [vmem:[#allocation2] sm:$0xff]  ;;  %v60_v11 = vld [vmem:[#allocation5 + $0x38] sm:$0xff]  ;;  %s320_s13 = scalar_lea.vmem %s172_s12, 256  ;;  %p325_p3 = scmp.lt.s32.totalorder %s172_s12, %s172_s12 }
  0x29   :  { %239 = vmatprep.subr.bf16.mxu0 %v238_v3  ;;  %v246_v8 = vpack.c.bf16 %v58_v7, %v57_v6  ;;  %v59_v10 = vld [vmem:[#allocation5 + $0x30] sm:$0xff]  ;;  %235 = vmatprep.mubr.f32.mxu0 %v51_v9  ;;  %v61_v13 = vld [vmem:[#allocation5 + $0x40] sm:$0xff]  ;;  %v62_v14 = vld [vmem:[#allocation5 + $0x48] sm:$0xff]  ;;  %p321_p2 = scmp.ne.s32.totalorder %s172_s12, %s320_s13  ;;  %p326_p4 = scmp.lt.s32.totalorder %s320_s13, %s320_s13 }
  0x2a   :  { %241 = vmatpush3.bf16.msra.mxu0 %v238_v3  ;;  %v250_v12 = vpack.c.bf16 %v60_v11, %v59_v10  ;;  %v254_v15 = vpack.c.bf16 %v62_v14, %v61_v13  ;;  %v63_v16 = vld [vmem:[#allocation5 + $0x50] sm:$0xff]  ;;  %v64_v17 = vld [vmem:[#allocation5 + $0x58] sm:$0xff]  ;;  %v65_v19 = vld [vmem:[#allocation5 + $0x60] sm:$0xff] }
  0x2b   :  { %243 = vmatprep.subr.bf16.mxu0 %v242_v5  ;;  %v258_v18 = vpack.c.bf16 %v64_v17, %v63_v16  ;;  %v66_v20 = vld [vmem:[#allocation5 + $0x68] sm:$0xff]  ;;  %v67_v22 = vld [vmem:[#allocation5 + $0x70] sm:$0xff]  ;;  %v68_v23 = vld [vmem:[#allocation5 + $0x78] sm:$0xff]  ;;  %p327_p5 = por %p326_p4, %p325_p3 }
  0x2c   :  { %v262_v21 = vpack.c.bf16 %v66_v20, %v65_v19  ;;  %v266_v24 = vpack.c.bf16 %v68_v23, %v67_v22  ;;  %v52_v25 = vld [vmem:[#allocation2 + $0x8] sm:$0xff]  ;;  %v184_v27 = vld [vmem:[%s423_s2] ss:$0 sm:$0xff] }
  0x2d   :  { %p328_p6 = pnand %p327_p5, %p321_p2 }
  0x2e   :  { %245 = vmatpush3.bf16.msra.mxu0 %v242_v5 }
  0x2f   :  { %247 = vmatprep.subr.bf16.mxu0 %v246_v8 }
  0x32   :  { %249 = vmatpush3.bf16.msra.mxu0 %v246_v8 }
  0x33   :  { %251 = vmatprep.subr.bf16.mxu0 %v250_v12 }
  0x36   :  { %253 = vmatpush3.bf16.msra.mxu0 %v250_v12 }
  0x37   :  { %255 = vmatprep.subr.bf16.mxu0 %v254_v15 }
  0x3a   :  { %257 = vmatpush3.bf16.msra.mxu0 %v254_v15 }
  0x3b   :  { %259 = vmatprep.subr.bf16.mxu0 %v258_v18 }
  0x3e   :  { %261 = vmatpush3.bf16.msra.mxu0 %v258_v18 }
  0x3f   :  { %263 = vmatprep.subr.bf16.mxu0 %v262_v21 }
  0x42   :  { %265 = vmatpush3.bf16.msra.mxu0 %v262_v21 }
  0x43   :  { %267 = vmatprep.subr.bf16.mxu0 %v266_v24 }
  0x46   :  { %269 = vmatpush3.bf16.msra.mxu0 %v266_v24 }
  0x49   :  { %236 = vmatmul.mubr.f32.vlgmr.msra.gmra.mrb[0].mxu0 %v52_v25 }
 0x11c   :  { %v237_v26 = vpop.f32.mrb[0].mxu0 }
 0x11d   :  { %v135_v28 = vpop.f32.mrb[1].mxu0  ;;  %v161_v29 = vadd.f32 %v237_v26, %v184_v27 }
 0x11e   :  { %v160_v30 = vadd.f32 %v184_v27, %v135_v28 }
 0x11f   :  { %v163_v31 = vmax.f32 %v161_v29, 0.0 }
 0x120   :  { %v162_v32 = vmax.f32 %v160_v30, 0.0 }
 0x121   :  { %165 = vst [vmem:[#allocation7 + $0x8] sm:$0xff] %v163_v31 }
 0x122   :  { %164 = vst [vmem:[#allocation7] sm:$0xff] %v162_v32 }
 0x123   :  { %331 = shalt.err (!%p328_p6)
}
 0x124   :  { %s332_s2 = scalar_lea.hbm %s424_s3, 256 }
 0x125   :  { %p333_p7 = scmp.ne.s32.totalorder %s424_s3, %s332_s2  ;;  %p336_p8 = scmp.lt.u32.totalorder %s332_s2, %s424_s3 }
 0x127   :  { %p338_p9 = pnand %p336_p8, %p333_p7 }
 0x129   :  { %341 = shalt.err (!%p338_p9)
}
 0x12a   :  { %177 = dma.vmem_to_hbm [thread:$0]  %s172_s12, 256, %s424_s3, [#allocation4], %s349_s22, %s349_s22, %s350_s23  }
 0x12b   :  { %346 = dma.done.wait [#allocation4], 256  }
 0x12c   :  { %347 = vsyncadd [#allocation4], 4294967040 }
 0x12d   :  { %181 = vsyncpa [#allocation3], 1 }
 0x12e   :  { %182 = vsyncpa [#allocation6], 1 }
 0x12f   :  { %183 = vsyncpa [#allocation4], 1 }

</bundles_post_ra>
